<compile_context>
chip_gen: v5e
topology: v5e:2x2
jax: 0.10.0
libtpu: 0.0.40
codegen_flags: <defaults>
</compile_context>

<pallas_src>
import jax
import jax.numpy as jnp
from jax.experimental import pallas as pl
from jax.experimental.pallas import tpu as pltpu


def _fastexp_gist(x):
    """Schraudolph fast-exp, bit-exact port of fastexp_gist (fp32)."""
    y = x.astype(jnp.float32) * 12102203.17133801 + 1064986823.010288
    y = jnp.where(y < 8388608.0, 0.0, y).astype(jnp.float32)
    y = jnp.where(y > 2139095040.0, 2139095040.0, y).astype(jnp.float32)
    # float -> int (truncation) -> reinterpret bits as float32.  Values are in
    # [0, 2139095040] so the int32 conversion matches the uint32 bit pattern.
    n = y.astype(jnp.int32)
    return pltpu.bitcast(n, jnp.float32)


def _mhsa_kernel(x_ref, wq_ref, wk_ref, wv_ref, wo_ref, o_ref):
    # x_ref : (1, T, dim)   one sequence of the batch
    # wq/wk/wv : (H, dim, hd)  head-major projections (scaling folded into wq)
    # wo_ref : (H, hd, dim)    head-major output projection
    H = wq_ref.shape[0]
    x = x_ref[0]                                        # (T, dim) f32
    xb = jnp.broadcast_to(x, (H,) + x.shape)            # (H, T, dim)

    # Per-head projections as leading-batch matmuls (no lane slicing, no .T,
    # no concat).  Total FLOPs identical to the fused (T,dim)@(dim,3*att) GEMM.
    q = jnp.einsum("htd,hdf->htf", xb, wq_ref[...],
                   preferred_element_type=jnp.float32)  # (H, T, hd)
    k = jnp.einsum("htd,hdf->htf", xb, wk_ref[...],
                   preferred_element_type=jnp.float32)
    v = jnp.einsum("htd,hdf->htf", xb, wv_ref[...],
                   preferred_element_type=jnp.float32)

    # Scores (1/sqrt(hd) already folded into wq host-side).
    s = jnp.einsum("hqd,hkd->hqk", q, k,
                   preferred_element_type=jnp.float32)  # (H, T, T)

    # own_softmax_fastexp: max-subtracted fastexp softmax along the last axis,
    # normalized with an EUP reciprocal instead of a VPU divide.
    m = jnp.max(s, axis=-1, keepdims=True)
    e = _fastexp_gist(s - m)
    p = e * pl.reciprocal(jnp.sum(e, axis=-1, keepdims=True), approx=True)

    ctx = jnp.einsum("hqk,hkd->hqd", p, v,
                     preferred_element_type=jnp.float32)  # (H, T, hd)

    # Output projection per head, then reduce over heads (replaces the
    # lane-axis concat of per-head contexts).
    outh = jnp.einsum("hqd,hdo->hqo", ctx, wo_ref[...],
                      preferred_element_type=jnp.float32)  # (H, T, dim)
    # TODO(synk): with dim=32 the final store is lane-masked (<128 lanes); at
    # realistic batch sizes pack several sequences lane-dense and reshape in
    # the wrapper (free layout plumbing) for unmasked vst.
    o_ref[0] = jnp.sum(outh, axis=0)                     # (T, dim)


def mhsa_forward(x, w_in_t, w_out_t, num_heads):
    """Multi-headed self-attention forward.

    x       : (tgt_len, dim) or (batch, tgt_len, dim), fp32
    w_in_t  : (dim, 3*att_dim)   == proj_in.weight.T  (bias=False)
    w_out_t : (att_dim, dim)     == proj_out.weight.T (bias=False)
    """
    squeeze = x.ndim == 2
    if squeeze:
        x = x[None]
    batch, tgt_len, dim = x.shape
    att_dim = w_in_t.shape[1] // 3
    head_dim = att_dim // num_heads
    scaling = float(head_dim) ** (-0.5)

    # Host-side, one-time weight permutation into head-major layouts; fold the
    # attention scaling into the Q projection columns (free).
    wq = (w_in_t[:, :att_dim] * scaling).reshape(dim, num_heads, head_dim)
    wq = jnp.transpose(wq, (1, 0, 2))                                  # (H, dim, hd)
    wk = jnp.transpose(
        w_in_t[:, att_dim:2 * att_dim].reshape(dim, num_heads, head_dim),
        (1, 0, 2))                                                     # (H, dim, hd)
    wv = jnp.transpose(
        w_in_t[:, 2 * att_dim:].reshape(dim, num_heads, head_dim),
        (1, 0, 2))                                                     # (H, dim, hd)
    wo = w_out_t.reshape(num_heads, head_dim, dim)                     # (H, hd, dim)

    out = pl.pallas_call(
        _mhsa_kernel,
        out_shape=jax.ShapeDtypeStruct((batch, tgt_len, dim), jnp.float32),
        grid_spec=pltpu.PrefetchScalarGridSpec(
            num_scalar_prefetch=0,
            grid=(batch,),
            in_specs=[
                pl.BlockSpec((1, tgt_len, dim), lambda b: (b, 0, 0)),
                pl.BlockSpec((num_heads, dim, head_dim), lambda b: (0, 0, 0)),
                pl.BlockSpec((num_heads, dim, head_dim), lambda b: (0, 0, 0)),
                pl.BlockSpec((num_heads, dim, head_dim), lambda b: (0, 0, 0)),
                pl.BlockSpec((num_heads, head_dim, dim), lambda b: (0, 0, 0)),
            ],
            out_specs=pl.BlockSpec((1, tgt_len, dim), lambda b: (b, 0, 0)),
        ),
        compiler_params=pltpu.CompilerParams(
            dimension_semantics=("parallel",)),
    )(x, wq, wk, wv, wo)

    return out[0] if squeeze else out


def _reference(x, w_in_t, w_out_t, num_heads):
    """Pure-JAX reference mirroring the PyTorch forward (single sequence)."""
    tgt_len, dim = x.shape
    att_dim = w_in_t.shape[1] // 3
    head_dim = att_dim // num_heads
    scaling = float(head_dim) ** (-0.5)

    def fastexp(z):
        y = z.astype(jnp.float32) * 12102203.17133801 + 1064986823.010288
        y = jnp.where(y < 8388608.0, 0.0, y).astype(jnp.float32)
        y = jnp.where(y > 2139095040.0, 2139095040.0, y).astype(jnp.float32)
        return jax.lax.bitcast_convert_type(y.astype(jnp.int32), jnp.float32)

    qkv = x @ w_in_t
    q, k, v = jnp.split(qkv, 3, axis=-1)
    q = q.reshape(tgt_len, num_heads, head_dim).transpose(1, 0, 2)
    k = k.reshape(tgt_len, num_heads, head_dim).transpose(1, 0, 2)
    v = v.reshape(tgt_len, num_heads, head_dim).transpose(1, 0, 2)
    s = jnp.einsum("htd,hsd->hts", q, k) * scaling
    m = jnp.max(s, axis=-1, keepdims=True)
    e = fastexp(s - m)
    p = e / jnp.sum(e, axis=-1, keepdims=True)
    ctx = jnp.einsum("hts,hsd->htd", p, v)
    ctx = ctx.transpose(1, 0, 2).reshape(tgt_len, att_dim)
    return ctx @ w_out_t


if __name__ == "__main__":
    # Module config: dim=32, heads=4, att_dim=32 -> head_dim=8, tgt_len=8.
    # A small batch of sequences exercises the parallel grid axis.
    dim, num_heads, att_dim, tgt_len = 32, 4, 32, 8
    batch = 8

    key = jax.random.PRNGKey(0)
    kx, kw1, kw2 = jax.random.split(key, 3)

    x = jax.random.normal(kx, (batch, tgt_len, dim), dtype=jnp.float32)
    # Deterministic "Linear" weights, passed transposed as (in, out).
    w_in_t = (jax.random.normal(kw1, (dim, 3 * att_dim), dtype=jnp.float32)
              * 0.1)
    w_out_t = (jax.random.normal(kw2, (att_dim, dim), dtype=jnp.float32)
               * 0.1)

    # Batched path (grid over sequences, parallel semantics).
    out = mhsa_forward(x, w_in_t, w_out_t, num_heads)
    out = jax.block_until_ready(out)
    ref = jax.vmap(lambda xb: _reference(xb, w_in_t, w_out_t, num_heads))(x)
    assert out.shape == (batch, tgt_len, dim)
    assert jnp.allclose(out, ref, rtol=1e-2, atol=1e-2)

    # Single-sequence path (matches the PyTorch module's forward signature).
    out1 = mhsa_forward(x[0], w_in_t, w_out_t, num_heads)
    out1 = jax.block_until_ready(out1)
    assert out1.shape == (tgt_len, dim)
    assert jnp.allclose(out1, ref[0], rtol=1e-2, atol=1e-2)

    print("KERNEL_OK")
</pallas_src>

<mosaic_0001>
module attributes {stable_mosaic.version = 11 : i64} {
  func.func @_mhsa_kernel(%arg0: i32, %arg1: memref<1x8x32xf32, #tpu.memory_space<vmem>>, %arg2: memref<4x32x8xf32, #tpu.memory_space<vmem>>, %arg3: memref<4x32x8xf32, #tpu.memory_space<vmem>>, %arg4: memref<4x32x8xf32, #tpu.memory_space<vmem>>, %arg5: memref<4x8x32xf32, #tpu.memory_space<vmem>>, %arg6: memref<1x8x32xf32, #tpu.memory_space<vmem>>) attributes {dimension_semantics = [#tpu.dimension_semantics<parallel>], iteration_bounds = array<i64: 8>, scalar_prefetch = 0 : i64, scratch_operands = 0 : i64, tpu.core_type = #tpu.core_type<tc>, window_params = [{transform_indices = @transform_0, window_bounds = array<i64: 1, 8, 32>}, {pipeline_mode = #tpu.pipeline_mode<synchronous>, transform_indices = @transform_1, window_bounds = array<i64: 4, 32, 8>}, {pipeline_mode = #tpu.pipeline_mode<synchronous>, transform_indices = @transform_2, window_bounds = array<i64: 4, 32, 8>}, {pipeline_mode = #tpu.pipeline_mode<synchronous>, transform_indices = @transform_3, window_bounds = array<i64: 4, 32, 8>}, {pipeline_mode = #tpu.pipeline_mode<synchronous>, transform_indices = @transform_4, window_bounds = array<i64: 4, 8, 32>}, {transform_indices = @transform_5, window_bounds = array<i64: 1, 8, 32>}]} {
    %c0 = arith.constant 0 : index
    %c0_0 = arith.constant 0 : index
    %c0_1 = arith.constant 0 : index
    %0 = vector.load %arg1[%c0, %c0_0, %c0_1] : memref<1x8x32xf32, #tpu.memory_space<vmem>>, vector<1x8x32xf32>
    %1 = vector.shape_cast %0 : vector<1x8x32xf32> to vector<8x32xf32>
    %2 = vector.shape_cast %1 : vector<8x32xf32> to vector<1x8x32xf32>
    %3 = vector.broadcast %2 : vector<1x8x32xf32> to vector<4x8x32xf32>
    %c0_2 = arith.constant 0 : index
    %c0_3 = arith.constant 0 : index
    %c0_4 = arith.constant 0 : index
    %4 = vector.load %arg2[%c0_2, %c0_3, %c0_4] : memref<4x32x8xf32, #tpu.memory_space<vmem>>, vector<4x32x8xf32>
    "tpu.trace_start"() <{level = 10 : i32, message = "htd,hdf->htf"}> : () -> ()
    %cst = arith.constant dense<0.000000e+00> : vector<4x8x8xf32>
    %5 = tpu.matmul %3, %4, %cst {dimension_numbers = #tpu.dot_dimension_numbers<[2], [1], [1], [2], [0, 0, 0, 1, 1, 2], [0], [0]>} : vector<4x8x32xf32>, vector<4x32x8xf32>, vector<4x8x8xf32> -> vector<4x8x8xf32>
    "tpu.trace_stop"() : () -> ()
    %c0_5 = arith.constant 0 : index
    %c0_6 = arith.constant 0 : index
    %c0_7 = arith.constant 0 : index
    %6 = vector.load %arg3[%c0_5, %c0_6, %c0_7] : memref<4x32x8xf32, #tpu.memory_space<vmem>>, vector<4x32x8xf32>
    "tpu.trace_start"() <{level = 10 : i32, message = "htd,hdf->htf"}> : () -> ()
    %cst_8 = arith.constant dense<0.000000e+00> : vector<4x8x8xf32>
    %7 = tpu.matmul %3, %6, %cst_8 {dimension_numbers = #tpu.dot_dimension_numbers<[2], [1], [1], [2], [0, 0, 0, 1, 1, 2], [0], [0]>} : vector<4x8x32xf32>, vector<4x32x8xf32>, vector<4x8x8xf32> -> vector<4x8x8xf32>
    "tpu.trace_stop"() : () -> ()
    %c0_9 = arith.constant 0 : index
    %c0_10 = arith.constant 0 : index
    %c0_11 = arith.constant 0 : index
    %8 = vector.load %arg4[%c0_9, %c0_10, %c0_11] : memref<4x32x8xf32, #tpu.memory_space<vmem>>, vector<4x32x8xf32>
    "tpu.trace_start"() <{level = 10 : i32, message = "htd,hdf->htf"}> : () -> ()
    %cst_12 = arith.constant dense<0.000000e+00> : vector<4x8x8xf32>
    %9 = tpu.matmul %3, %8, %cst_12 {dimension_numbers = #tpu.dot_dimension_numbers<[2], [1], [1], [2], [0, 0, 0, 1, 1, 2], [0], [0]>} : vector<4x8x32xf32>, vector<4x32x8xf32>, vector<4x8x8xf32> -> vector<4x8x8xf32>
    "tpu.trace_stop"() : () -> ()
    "tpu.trace_start"() <{level = 10 : i32, message = "hqd,hkd->hqk"}> : () -> ()
    %cst_13 = arith.constant dense<0.000000e+00> : vector<4x8x8xf32>
    %10 = tpu.matmul %5, %7, %cst_13 {dimension_numbers = #tpu.dot_dimension_numbers<[2], [2], [1], [1], [0, 0, 0, 1, 1, 1], [0], [0]>} : vector<4x8x8xf32>, vector<4x8x8xf32>, vector<4x8x8xf32> -> vector<4x8x8xf32>
    "tpu.trace_stop"() : () -> ()
    %cst_14 = arith.constant dense<0xFF800000> : vector<4x8xf32>
    %11 = vector.multi_reduction <maximumf>, %10, %cst_14 [2] : vector<4x8x8xf32> to vector<4x8xf32>
    %12 = vector.shape_cast %11 : vector<4x8xf32> to vector<4x8x1xf32>
    %13 = vector.broadcast %12 : vector<4x8x1xf32> to vector<4x8x8xf32>
    %14 = arith.subf %10, %13 : vector<4x8x8xf32>
    %cst_15 = arith.constant 0x4B38AA3B : f32
    %15 = vector.broadcast %cst_15 : f32 to vector<4x8x8xf32>
    %16 = arith.mulf %14, %15 : vector<4x8x8xf32>
    %cst_16 = arith.constant 1.06498682E+9 : f32
    %17 = vector.broadcast %cst_16 : f32 to vector<4x8x8xf32>
    %18 = arith.addf %16, %17 : vector<4x8x8xf32>
    %cst_17 = arith.constant 0x4B000000 : f32
    %19 = vector.broadcast %cst_17 : f32 to vector<4x8x8xf32>
    %20 = arith.cmpf olt, %18, %19 : vector<4x8x8xf32>
    %cst_18 = arith.constant 0.000000e+00 : f32
    %21 = vector.broadcast %cst_18 : f32 to vector<4x8x8xf32>
    %22 = arith.select %20, %21, %18 : vector<4x8x8xi1>, vector<4x8x8xf32>
    %cst_19 = arith.constant 2.13909504E+9 : f32
    %23 = vector.broadcast %cst_19 : f32 to vector<4x8x8xf32>
    %24 = arith.cmpf ogt, %22, %23 : vector<4x8x8xf32>
    %cst_20 = arith.constant 2.13909504E+9 : f32
    %25 = vector.broadcast %cst_20 : f32 to vector<4x8x8xf32>
    %26 = arith.select %24, %25, %22 : vector<4x8x8xi1>, vector<4x8x8xf32>
    %27 = arith.fptosi %26 : vector<4x8x8xf32> to vector<4x8x8xi32>
    %28 = tpu.bitcast %27 : vector<4x8x8xi32> -> vector<4x8x8xf32>
    %cst_21 = arith.constant dense<0.000000e+00> : vector<4x8xf32>
    %29 = vector.multi_reduction <add>, %28, %cst_21 [2] : vector<4x8x8xf32> to vector<4x8xf32>
    %30 = vector.shape_cast %29 : vector<4x8xf32> to vector<4x8x1xf32>
    %31 = tpu.reciprocal %30 {approx = true} : vector<4x8x1xf32> -> vector<4x8x1xf32>
    %32 = vector.broadcast %31 : vector<4x8x1xf32> to vector<4x8x8xf32>
    %33 = arith.mulf %28, %32 : vector<4x8x8xf32>
    "tpu.trace_start"() <{level = 10 : i32, message = "hqk,hkd->hqd"}> : () -> ()
    %cst_22 = arith.constant dense<0.000000e+00> : vector<4x8x8xf32>
    %34 = tpu.matmul %33, %9, %cst_22 {dimension_numbers = #tpu.dot_dimension_numbers<[2], [1], [1], [2], [0, 0, 0, 1, 1, 2], [0], [0]>} : vector<4x8x8xf32>, vector<4x8x8xf32>, vector<4x8x8xf32> -> vector<4x8x8xf32>
    "tpu.trace_stop"() : () -> ()
    %c0_23 = arith.constant 0 : index
    %c0_24 = arith.constant 0 : index
    %c0_25 = arith.constant 0 : index
    %35 = vector.load %arg5[%c0_23, %c0_24, %c0_25] : memref<4x8x32xf32, #tpu.memory_space<vmem>>, vector<4x8x32xf32>
    "tpu.trace_start"() <{level = 10 : i32, message = "hqd,hdo->hqo"}> : () -> ()
    %cst_26 = arith.constant dense<0.000000e+00> : vector<4x8x32xf32>
    %36 = tpu.matmul %34, %35, %cst_26 {dimension_numbers = #tpu.dot_dimension_numbers<[2], [1], [1], [2], [0, 0, 0, 1, 1, 2], [0], [0]>} : vector<4x8x8xf32>, vector<4x8x32xf32>, vector<4x8x32xf32> -> vector<4x8x32xf32>
    "tpu.trace_stop"() : () -> ()
    %cst_27 = arith.constant dense<0.000000e+00> : vector<8x32xf32>
    %37 = vector.multi_reduction <add>, %36, %cst_27 [0] : vector<4x8x32xf32> to vector<8x32xf32>
    %c0_28 = arith.constant 0 : index
    %c0_29 = arith.constant 0 : index
    %c0_30 = arith.constant 0 : index
    %38 = vector.load %arg6[%c0_28, %c0_29, %c0_30] : memref<1x8x32xf32, #tpu.memory_space<vmem>>, vector<1x8x32xf32>
    %39 = vector.shape_cast %38 : vector<1x8x32xf32> to vector<8x32xf32>
    %40 = vector.shape_cast %37 : vector<8x32xf32> to vector<1x8x32xf32>
    tpu.vector_store %arg6[%c0_28, %c0_29, %c0_30], %40 {strides = array<i32>} : memref<1x8x32xf32, #tpu.memory_space<vmem>>, vector<1x8x32xf32>,
    return
  }
  func.func @transform_0(%arg0: i32) -> (i32, i32, i32) {
    %c0_i32 = arith.constant 0 : i32
    %c0_i32_0 = arith.constant 0 : i32
    %c0_i32_1 = arith.constant 0 : i32
    return %arg0, %c0_i32, %c0_i32_0 : i32, i32, i32
  }
  func.func @transform_1(%arg0: i32) -> (i32, i32, i32) {
    %c0_i32 = arith.constant 0 : i32
    %c0_i32_0 = arith.constant 0 : i32
    %c0_i32_1 = arith.constant 0 : i32
    %c0_i32_2 = arith.constant 0 : i32
    return %c0_i32, %c0_i32_0, %c0_i32_1 : i32, i32, i32
  }
  func.func @transform_2(%arg0: i32) -> (i32, i32, i32) {
    %c0_i32 = arith.constant 0 : i32
    %c0_i32_0 = arith.constant 0 : i32
    %c0_i32_1 = arith.constant 0 : i32
    %c0_i32_2 = arith.constant 0 : i32
    return %c0_i32, %c0_i32_0, %c0_i32_1 : i32, i32, i32
  }
  func.func @transform_3(%arg0: i32) -> (i32, i32, i32) {
    %c0_i32 = arith.constant 0 : i32
    %c0_i32_0 = arith.constant 0 : i32
    %c0_i32_1 = arith.constant 0 : i32
    %c0_i32_2 = arith.constant 0 : i32
    return %c0_i32, %c0_i32_0, %c0_i32_1 : i32, i32, i32
  }
  func.func @transform_4(%arg0: i32) -> (i32, i32, i32) {
    %c0_i32 = arith.constant 0 : i32
    %c0_i32_0 = arith.constant 0 : i32
    %c0_i32_1 = arith.constant 0 : i32
    %c0_i32_2 = arith.constant 0 : i32
    return %c0_i32, %c0_i32_0, %c0_i32_1 : i32, i32, i32
  }
  func.func @transform_5(%arg0: i32) -> (i32, i32, i32) {
    %c0_i32 = arith.constant 0 : i32
    %c0_i32_0 = arith.constant 0 : i32
    %c0_i32_1 = arith.constant 0 : i32
    return %arg0, %c0_i32, %c0_i32_0 : i32, i32, i32
  }
}

</mosaic_0001>

<bundles_post_ra>
// kernel: tpu_custom_call.1
= control target key start
LH: loop header
LB: loop body
LE: loop exit
PB: predicated region body
PF: predicated region fallthrough
CT: control target
= control target key end

     0   :  { %10 = vsyncpa [#allocation3], 0  ;;  %s1452_s0 = inlined_call_operand.vmem [shape: f32[8,8,32], index: 0, kind: input, shape index: {}]   ;;  %s1453_s1 = inlined_call_operand.vmem [shape: f32[4,32,8], index: 1, kind: input, shape index: {}]   ;;  %s1454_s2 = inlined_call_operand.vmem [shape: f32[4,32,8], index: 2, kind: input, shape index: {}]   ;;  %s1455_s3 = inlined_call_operand.vmem [shape: f32[4,32,8], index: 3, kind: input, shape index: {}]   ;;  %s1456_s4 = inlined_call_operand.vmem [shape: f32[4,8,32], index: 4, kind: input, shape index: {}]   ;;  %s1457_s5 = inlined_call_operand.hbm [shape: f32[8,8,32], index: 5, kind: output, shape index: {}]  }
   0x1   :  { %12 = vsyncpa [#allocation3 + $0x1], 0  ;;  %s1156_s18 = smov 0   ;;  %s1158_s19 = smov 0  }
   0x2   :  { %s1160_s20 = smov 0   ;;  %s1162_s21 = smov 0  }
   0x3 LB: > { %s1177_s22 = sadd.s32 4294967295, %s1124_s21   ;;  %s957_s23 = sadd.s32 4294967294, %s1124_s21   ;;  %s1124_s21 = sphi %s1162_s21, %s1463_s21   ;;  %s1120_s20 = sphi %s1160_s20, %s1462_s20   ;;  %s1116_s19 = sphi %s1158_s19, %s1461_s19   ;;  %s1112_s18 = sphi %s1156_s18, %s1460_s18  }
   0x4   : > { %s1181_s24 = sadd.s32 1, %s1124_s21   ;;  %s135_s25 = sadd.s32 1, %s1120_s20 }
   0x5   : > { %s132_s26 = ssub.s32 %s1124_s21, %s1181_s24  ;;  %p145_p0 = scmp.ne.s32.totalorder %s1120_s20, %s1116_s19 }
   0x6   : > { %p133_p1 = scmp.eq.s32.totalorder %s132_s26, 0  ;;  %p146_p2 = scmp.eq.s32.totalorder %s1177_s22, 7 }
   0x7   : > { %p151_p3 = scmp.ne.s32.totalorder %s1116_s19, %s1112_s18  ;;  %p152_p4 = scmp.eq.s32.totalorder %s957_s23, 7 }
   0x8   : > { %s1192_s27 = scalar_select %p133_p1, %s1120_s20, %s135_s25  }
   0x9   : > { %p1194_p5 = por %p146_p2, %p145_p0  ;;  %p1198_p6 = por %p152_p4, %p151_p3 }
   0xa   : > { %p960_p7 = scmp.ge.s32.totalorder %s1124_s21, 1  ;;  %p189_p8 = scmp.lt.s32.totalorder %s1124_s21, 9 }
   0xc   : > { %p190_p9 = pnand %p960_p7, %p189_p8 }
   0xd   : > { %p216_p10 = scmp.lt.s32.totalorder (!%p190_p9), %s1177_s22, 7  ;;  %s213_s23 = sand.u32 (!%p190_p9), 1, %s1116_s19  }
   0xe   : > { %193 = sbr.rel (%p190_p9) target bundleno = 840 (0x348), region = 40  ;;  %s992_s26 = sshll.u32 (!%p190_p9), %s1177_s22, 3 }
   0xf   : > { %s893_s7 = scalar_lea.hbm (!%p190_p9), %s1457_s5, %s992_s26  ;;  %s1082_s15 = scalar_lea.hbm (!%p190_p9), %s1457_s5, 64 }
  0x10   : > { %s897_s10 = sshll.u32 (!%p190_p9), %s893_s7, 4  ;;  %s898_s10 = int_to_ptr.hbm [resolvable:$true] %s897_s10 }
  0x11   : > { %s1076_s11 = sshra.s32 (!%p190_p9), %s898_s10, 4  ;;  %s1077_s11 = int_to_ptr.hbm [resolvable:$true] %s1076_s11 }
  0x12   : > { %p1083_p0 = scmp.lt.s32.totalorder (!%p190_p9), %s1077_s11, %s1457_s5 }
  0x13   : > { %v224_v0 = vld [vmem:[%s1453_s1 + $0x18] sm:$0xff]  ;;  %v223_v3 = vld [vmem:[%s1453_s1 + $0x10] sm:$0xff]  ;;  %v222_v6 = vld [vmem:[%s1453_s1 + $0x8] sm:$0xff]  ;;  %s217_s30 = scalar_select %p216_p10, %s1177_s22, 7  ;;  %vm237_vm0 = vcmask 261120   ;;  %vm513_vm1 = vcmask 64512  }
  0x14   : > { %v232_v1 = vld [vmem:[%s1453_s1 + $0x58] sm:$0xff]  ;;  %253 = vmatpush.msra.mxu0 %v224_v0  ;;  %v231_v4 = vld [vmem:[%s1453_s1 + $0x50] sm:$0xff]  ;;  %v230_v7 = vld [vmem:[%s1453_s1 + $0x48] sm:$0xff]  ;;  %s883_s22 = scalar_lea.sflag [#allocation3], %s213_s23 }
  0x15   : > { %v236_v2 = vld [vmem:[%s1453_s1 + $0x78] sm:$0xff]  ;;  %293 = vmatpush.msra.mxu2 %v232_v1  ;;  %v235_v5 = vld [vmem:[%s1453_s1 + $0x70] sm:$0xff]  ;;  %v234_v8 = vld [vmem:[%s1453_s1 + $0x68] sm:$0xff]  ;;  %s962_s12 = sshll.u32 %s217_s30, 3 }
  0x16   : > { %313 = vmatpush.msra.mxu3 %v236_v2  ;;  %254 = vmatpush.msra.mxu0 %v223_v3  ;;  %v221_v9 = vld [vmem:[%s1453_s1] sm:$0xff]  ;;  %v228_v11 = vld [vmem:[%s1453_s1 + $0x38] sm:$0xff]  ;;  %s219_s25 = scalar_lea.vmem %s1452_s0, %s962_s12  ;;  %v227_v17 = vld [vmem:[%s1453_s1 + $0x30] sm:$0xff]  ;;  %s1078_s12 = scalar_lea.hbm %s1077_s11, 8 }
  0x17   : > { %294 = vmatpush.msra.mxu2 %v231_v4  ;;  %v229_v10 = vld [vmem:[%s1453_s1 + $0x40] sm:$0xff]  ;;  %273 = vmatpush.msra.mxu1 %v228_v11  ;;  %v324_v14 = vld [vmem:[%s1454_s2 + $0x18] sm:$0xff]  ;;  %v323_v18 = vld [vmem:[%s1454_s2 + $0x10] sm:$0xff]  ;;  %p1079_p11 = scmp.ne.s32.totalorder %s1077_s11, %s1078_s12  ;;  %p1084_p1 = scmp.lt.s32.totalorder %s1082_s15, %s1078_s12 }
  0x18   : > { %314 = vmatpush.msra.mxu3 %v235_v5  ;;  %255 = vmatpush.msra.mxu0 %v222_v6  ;;  %v233_v12 = vld [vmem:[%s1453_s1 + $0x60] sm:$0xff]  ;;  %v332_v15 = vld [vmem:[%s1454_s2 + $0x58] sm:$0xff]  ;;  %v331_v19 = vld [vmem:[%s1454_s2 + $0x50] sm:$0xff] }
  0x19   : > { %295 = vmatpush.msra.mxu2 %v230_v7  ;;  %v1248_v13 = vld [vmem:[%s219_s25] sm:$0xff]  ;;  %v336_v16 = vld [vmem:[%s1454_s2 + $0x78] sm:$0xff]  ;;  %v335_v20 = vld [vmem:[%s1454_s2 + $0x70] sm:$0xff]  ;;  %274 = vmatpush.msra.mxu1 %v227_v17  ;;  %s961_s25 = sshll.u32 %s213_s23, 3  ;;  %p1080_p12 = pnand %p1079_p11, %p1194_p5 }
  0x1a   : > { %315 = vmatpush.msra.mxu3 %v234_v8  ;;  %256 = vmatpush.msra.mxu0 %v221_v9  ;;  %v226_v21 = vld [vmem:[%s1453_s1 + $0x28] sm:$0xff]  ;;  %v225_v25 = vld [vmem:[%s1453_s1 + $0x20] sm:$0xff]  ;;  %v328_v29 = vld [vmem:[%s1454_s2 + $0x38] sm:$0xff]  ;;  %s215_s8 = scalar_lea.vmem [#allocation2], %s961_s25  ;;  %p1085_p2 = por %p1084_p1, %p1083_p0 }
  0x1b   : > { %296 = vmatpush.msra.mxu2 %v229_v10  ;;  %963 = vmatmul.msk.f32.vlgmr.msra.gmra.mxu0 %vm237_vm0, %v1248_v13  ;;  %v322_v22 = vld [vmem:[%s1454_s2 + $0x8] sm:$0xff]  ;;  %v321_v26 = vld [vmem:[%s1454_s2] sm:$0xff]  ;;  %v420_v30 = vld [vmem:[%s1455_s3 + $0x18] sm:$0xff]  ;;  %s895_s9 = sshll.u32 %s215_s8, 4  ;;  %p1081_p13 = pneg %p1080_p12  ;;  %s896_s9 = int_to_ptr.vmem [resolvable:$true] %s895_s9 }
  0x1c   : > { %316 = vmatpush.msra.mxu3 %v233_v12  ;;  %965 = vmatmul.msk.f32.vlgmr.msra.gmra.mxu2 %vm237_vm0, %v1248_v13  ;;  %v330_v23 = vld [vmem:[%s1454_s2 + $0x48] sm:$0xff]  ;;  %v329_v27 = vld [vmem:[%s1454_s2 + $0x40] sm:$0xff]  ;;  %v327_v31 = vld [vmem:[%s1454_s2 + $0x30] sm:$0xff] }
  0x1d   : > { %966 = vmatmul.msk.f32.vlgmr.msra.gmra.mxu3 %vm237_vm0, %v1248_v13  ;;  %349 = vmatpush.msrb.mxu0 %v324_v14  ;;  %v334_v24 = vld [vmem:[%s1454_s2 + $0x68] sm:$0xff]  ;;  %v333_v28 = vld [vmem:[%s1454_s2 + $0x60] sm:$0xff]  ;;  %v419_v32 = vld [vmem:[%s1455_s3 + $0x10] sm:$0xff]  ;;  %p1086_p3 = pnand %p1085_p2, %p1081_p13 }
  0x1e   : > { %389 = vmatpush.msrb.mxu2 %v332_v15  ;;  %409 = vmatpush.msrb.mxu3 %v336_v16  ;;  %v326_v33 = vld [vmem:[%s1454_s2 + $0x28] sm:$0xff]  ;;  %v325_v34 = vld [vmem:[%s1454_s2 + $0x20] sm:$0xff]  ;;  %v428_v37 = vld [vmem:[%s1455_s3 + $0x58] sm:$0xff] }
  0x1f   : > { %350 = vmatpush.msrb.mxu0 %v323_v18  ;;  %275 = vmatpush.msra.mxu1 %v226_v21  ;;  %v418_v35 = vld [vmem:[%s1455_s3 + $0x8] sm:$0xff]  ;;  %v417_v36 = vld [vmem:[%s1455_s3] sm:$0xff]  ;;  %v432_v38 = vld [vmem:[%s1455_s3 + $0x78] sm:$0xff] }
  0x20   : > { %390 = vmatpush.msrb.mxu2 %v331_v19  ;;  %410 = vmatpush.msrb.mxu3 %v335_v20  ;;  %v424_v39 = vld [vmem:[%s1455_s3 + $0x38] sm:$0xff]  ;;  %v427_v40 = vld [vmem:[%s1455_s3 + $0x50] sm:$0xff]  ;;  %v426_v43 = vld [vmem:[%s1455_s3 + $0x48] sm:$0xff] }
  0x21   : > { %351 = vmatpush.msrb.mxu0 %v322_v22  ;;  %276 = vmatpush.msra.mxu1 %v225_v25  ;;  %v431_v41 = vld [vmem:[%s1455_s3 + $0x70] sm:$0xff]  ;;  %v430_v44 = vld [vmem:[%s1455_s3 + $0x68] sm:$0xff]  ;;  %v425_v46 = vld [vmem:[%s1455_s3 + $0x40] sm:$0xff] }
  0x22   : > { %391 = vmatpush.msrb.mxu2 %v330_v23  ;;  %411 = vmatpush.msrb.mxu3 %v334_v24  ;;  %v423_v42 = vld [vmem:[%s1455_s3 + $0x30] sm:$0xff]  ;;  %v422_v45 = vld [vmem:[%s1455_s3 + $0x28] sm:$0xff]  ;;  %v429_v47 = vld [vmem:[%s1455_s3 + $0x60] sm:$0xff] }
  0x23   : > { %352 = vmatpush.msrb.mxu0 %v321_v26  ;;  %964 = vmatmul.msk.f32.vlgmr.msra.gmra.mxu1 %vm237_vm0, %v1248_v13  ;;  %v421_v48 = vld [vmem:[%s1455_s3 + $0x20] sm:$0xff] }
  0x24   : > { %392 = vmatpush.msrb.mxu2 %v329_v27  ;;  %412 = vmatpush.msrb.mxu3 %v333_v28 }
  0x25   : > { %967 = vmatmul.msk.f32.vlgmr.msrb.gmra.mxu0 %vm237_vm0, %v1248_v13  ;;  %969 = vmatmul.msk.f32.vlgmr.msrb.gmra.mxu2 %vm237_vm0, %v1248_v13 }
  0x26   : > { %970 = vmatmul.msk.f32.vlgmr.msrb.gmra.mxu3 %vm237_vm0, %v1248_v13  ;;  %369 = vmatpush.msrb.mxu1 %v328_v29 }
  0x27   : > { %445 = vmatpush.msra.mxu0 %v420_v30  ;;  %485 = vmatpush.msra.mxu2 %v428_v37 }
  0x28   : > { %370 = vmatpush.msrb.mxu1 %v327_v31  ;;  %505 = vmatpush.msra.mxu3 %v432_v38 }
  0x29   : > { %446 = vmatpush.msra.mxu0 %v419_v32  ;;  %486 = vmatpush.msra.mxu2 %v427_v40 }
  0x2a   : > { %371 = vmatpush.msrb.mxu1 %v326_v33  ;;  %506 = vmatpush.msra.mxu3 %v431_v41 }
  0x2b   : > { %447 = vmatpush.msra.mxu0 %v418_v35  ;;  %487 = vmatpush.msra.mxu2 %v426_v43 }
  0x2c   : > { %372 = vmatpush.msrb.mxu1 %v325_v34  ;;  %507 = vmatpush.msra.mxu3 %v430_v44 }
  0x2d   : > { %968 = vmatmul.msk.f32.vlgmr.msrb.gmra.mxu1 %vm237_vm0, %v1248_v13  ;;  %448 = vmatpush.msra.mxu0 %v417_v36 }
  0x2e   : > { %465 = vmatpush.msra.mxu1 %v424_v39  ;;  %971 = vmatmul.msk.f32.vlgmr.msra.gmra.mxu0 %vm237_vm0, %v1248_v13 }
  0x2f   : > { %488 = vmatpush.msra.mxu2 %v425_v46  ;;  %508 = vmatpush.msra.mxu3 %v429_v47 }
  0x30   : > { %466 = vmatpush.msra.mxu1 %v423_v42  ;;  %973 = vmatmul.msk.f32.vlgmr.msra.gmra.mxu2 %vm237_vm0, %v1248_v13 }
  0x31   : > { %974 = vmatmul.msk.f32.vlgmr.msra.gmra.mxu3 %vm237_vm0, %v1248_v13 }
  0x32   : > { %467 = vmatpush.msra.mxu1 %v422_v45 }
  0x34   : > { %468 = vmatpush.msra.mxu1 %v421_v48 }
  0x35   : > { %972 = vmatmul.msk.f32.vlgmr.msra.gmra.mxu1 %vm237_vm0, %v1248_v13 }
  0x98   : > { %v258_v49 = vpop.f32.mrf.mxu0 }
  0x9f   : > { %v298_v50 = vpop.f32.mrf.mxu2 }
  0xa0   : > { %v318_v51 = vpop.f32.mrf.mxu3  ;;  %v278_v52 = vpop.f32.mrf.mxu1 }
  0xa2   : > { %v354_v53 = vpop.f32.mrf.mxu0 }
  0xa3   : > { %975 = vmatpush.xpose.msk.msrb.mxu0 %vm513_vm1, %v354_v53 }
  0xa6   : > { %976 = vmatmul.msk.f32.vlgmr.msrb.gmra.mxu0 %vm513_vm1, %v258_v49 }
  0xa8   : > { %v394_v54 = vpop.f32.mrf.mxu2 }
  0xa9   : > { %v414_v55 = vpop.f32.mrf.mxu3  ;;  %979 = vmatpush.xpose.msk.msrb.mxu2 %vm513_vm1, %v394_v54 }
  0xaa   : > { %981 = vmatpush.xpose.msk.msrb.mxu3 %vm513_vm1, %v414_v55  ;;  %v374_v56 = vpop.f32.mrf.mxu1 }
  0xab   : > { %977 = vmatpush.xpose.msk.msrb.mxu1 %vm513_vm1, %v374_v56  ;;  %v450_v57 = vpop.f32.mrf.mxu0 }
  0xac   : > { %980 = vmatmul.msk.f32.vlgmr.msrb.gmra.mxu2 %vm513_vm1, %v298_v50  ;;  %704 = vmatpush.msra.mxu0 %v450_v57 }
  0xad   : > { %982 = vmatmul.msk.f32.vlgmr.msrb.gmra.mxu3 %vm513_vm1, %v318_v51 }
  0xae   : > { %978 = vmatmul.msk.f32.vlgmr.msrb.gmra.mxu1 %vm513_vm1, %v278_v52 }
  0xb2   : > { %v470_v58 = vpop.f32.mrf.mxu1 }
  0xb3   : > { %727 = vmatpush.msra.mxu1 %v470_v58  ;;  %v490_v59 = vpop.f32.mrf.mxu2 }
  0xb4   : > { %v510_v60 = vpop.f32.mrf.mxu3  ;;  %750 = vmatpush.msra.mxu2 %v490_v59 }
  0xb5   : > { %773 = vmatpush.msra.mxu3 %v510_v60 }
 0x123   : > { %v537_v61 = vpop.f32.mrf.mxu0 }
 0x124   : > { %v618_v62 = vsel %vm513_vm1, %v537_v61, -inf }
 0x125   : > { %619 = vmax.xlane.f32.xlu1 %v618_v62  ;;  %v779_v62 = vld [vmem:[%s1456_s4 + $0x8] sm:$0xff] }
 0x126   : > { %823 = vmatpush.msrb.mxu1 %v779_v62 }
 0x12b   : > { %v563_v63 = vpop.f32.mrf.mxu1 }
 0x12c   : > { %v621_v0 = vsel %vm513_vm1, %v563_v63, -inf }
 0x12d   : > { %622 = vmax.xlane.f32.xlu1 %v621_v0  ;;  %v781_v0 = vld [vmem:[%s1456_s4 + $0x18] sm:$0xff] }
 0x12e   : > { %869 = vmatpush.msrb.mxu3 %v781_v0 }
 0x12f   : > { %v589_v1 = vpop.f32.mrf.mxu2 }
 0x130   : > { %v624_v2 = vsel %vm513_vm1, %v589_v1, -inf  ;;  %v615_v3 = vpop.f32.mrf.mxu3 }
 0x131   : > { %625 = vmax.xlane.f32.xlu0 %v624_v2  ;;  %v627_v4 = vsel %vm513_vm1, %v615_v3, -inf }
 0x139   : > { %628 = vmax.xlane.f32.xlu0 %v627_v4 }
 0x198   : > { %v620_v5 = vpop.xlane.xlu1 %619 }
 0x199   : > { %v630_v6 = vsub.f32 %v537_v61, %v620_v5  ;;  %v778_v61 = vld [vmem:[%s1456_s4] sm:$0xff] }
 0x19a   : > { %800 = vmatpush.msrb.mxu0 %v778_v61 }
 0x19b   : > { %v634_v7 = vmul.f32 12102203.0, %v630_v6 }
 0x19d   : > { %v638_v8 = vadd.f32 1.0649868e+09, %v634_v7 }
 0x19f   : > { %vm642_vm2 = vcmp.lt.f32.partialorder %v638_v8, 8388608.0 }
 0x1a0   : > { %v646_v9 = vsel %vm642_vm2, 0.0, %v638_v8  ;;  %v623_v10 = vpop.xlane.xlu1 %622 }
 0x1a1   : > { %vm650_vm3 = vcmp.gt.f32.partialorder %v646_v9, 2.139095e+09  ;;  %v631_v11 = vsub.f32 %v563_v63, %v623_v10  ;;  %v780_v63 = vld [vmem:[%s1456_s4 + $0x10] sm:$0xff] }
 0x1a2   : > { %v654_v12 = vsel %vm650_vm3, 2.139095e+09, %v646_v9  ;;  %846 = vmatpush.msrb.mxu2 %v780_v63 }
 0x1a3   : > { %v996_v13 = vceil.f32 %v654_v12  ;;  %v997_v14 = vfloor.f32 %v654_v12  ;;  %v635_v15 = vmul.f32 12102203.0, %v631_v11  ;;  %vm995_vm4 = vcmp.lt.s32.totalorder %v654_v12, 0 }
 0x1a4   : > { %v626_v16 = vpop.xlane.xlu0 %625 }
 0x1a5   : > { %v639_v17 = vadd.f32 1.0649868e+09, %v635_v15  ;;  %v632_v18 = vsub.f32 %v589_v1, %v626_v16  ;;  %v998_v19 = vsel %vm995_vm4, %v996_v13, %v997_v14 }
 0x1a6   : > { %v999_v20 = vcvt.f32.s32 %v998_v19 }
 0x1a7   : > { %vm643_vm5 = vcmp.lt.f32.partialorder %v639_v17, 8388608.0  ;;  %v636_v21 = vmul.f32 12102203.0, %v632_v18 }
 0x1a8   : > { %v647_v22 = vsel %vm643_vm5, 0.0, %v639_v17  ;;  %v666_v23 = vsel %vm513_vm1, %v999_v20, 0.0 }
 0x1a9   : > { %vm651_vm6 = vcmp.gt.f32.partialorder %v647_v22, 2.139095e+09  ;;  %v640_v24 = vadd.f32 1.0649868e+09, %v636_v21  ;;  %667 = vadd.xlane.f32.xlu0 %v666_v23 }
 0x1aa   : > { %v655_v25 = vsel %vm651_vm6, 2.139095e+09, %v647_v22 }
 0x1ab   : > { %v1001_v26 = vceil.f32 %v655_v25  ;;  %v1002_v27 = vfloor.f32 %v655_v25  ;;  %vm644_vm7 = vcmp.lt.f32.partialorder %v640_v24, 8388608.0  ;;  %vm1000_vm8 = vcmp.lt.s32.totalorder %v655_v25, 0 }
 0x1ac   : > { %v648_v28 = vsel %vm644_vm7, 0.0, %v640_v24  ;;  %v629_v29 = vpop.xlane.xlu0 %628 }
 0x1ad   : > { %vm652_vm9 = vcmp.gt.f32.partialorder %v648_v28, 2.139095e+09  ;;  %v633_v30 = vsub.f32 %v615_v3, %v629_v29  ;;  %v1003_v31 = vsel %vm1000_vm8, %v1001_v26, %v1002_v27 }
 0x1ae   : > { %v656_v32 = vsel %vm652_vm9, 2.139095e+09, %v648_v28  ;;  %v1004_v33 = vcvt.f32.s32 %v1003_v31 }
 0x1af   : > { %v637_v34 = vmul.f32 12102203.0, %v633_v30  ;;  %vm1005_vm10 = vcmp.lt.s32.totalorder %v656_v32, 0  ;;  %v1006_v35 = vceil.f32 %v656_v32  ;;  %v1007_v36 = vfloor.f32 %v656_v32 }
 0x1b0   : > { %v669_v37 = vsel %vm513_vm1, %v1004_v33, 0.0 }
 0x1b1   : > { %v641_v38 = vadd.f32 1.0649868e+09, %v637_v34  ;;  %670 = vadd.xlane.f32.xlu1 %v669_v37  ;;  %v1008_v39 = vsel %vm1005_vm10, %v1006_v35, %v1007_v36 }
 0x1b2   : > { %v1009_v40 = vcvt.f32.s32 %v1008_v39 }
 0x1b3   : > { %vm645_vm11 = vcmp.lt.f32.partialorder %v641_v38, 8388608.0 }
 0x1b4   : > { %v649_v41 = vsel %vm645_vm11, 0.0, %v641_v38  ;;  %v672_v42 = vsel %vm513_vm1, %v1009_v40, 0.0 }
 0x1b5   : > { %vm653_vm12 = vcmp.gt.f32.partialorder %v649_v41, 2.139095e+09  ;;  %673 = vadd.xlane.f32.xlu2 %v672_v42 }
 0x1b6   : > { %v657_v43 = vsel %vm653_vm12, 2.139095e+09, %v649_v41 }
 0x1b7   : > { %v1011_v44 = vceil.f32 %v657_v43  ;;  %v1012_v45 = vfloor.f32 %v657_v43  ;;  %vm1010_vm13 = vcmp.lt.s32.totalorder %v657_v43, 0 }
 0x1b9   : > { %v1013_v46 = vsel %vm1010_vm13, %v1011_v44, %v1012_v45 }
 0x1ba   : > { %v1014_v47 = vcvt.f32.s32 %v1013_v46 }
 0x1bc   : > { %v675_v48 = vsel %vm513_vm1, %v1014_v47, 0.0 }
 0x1bd   : > { %676 = vadd.xlane.f32.xlu2 %v675_v48 }
 0x21c   : > { %v668_v49 = vpop.xlane.xlu0 %667 }
 0x21d   : > { %1054 = vrcp.f32 %v668_v49 }
 0x223   : > { %v1055_v50 = vpop.eup %1054 }
 0x224   : > { %v682_v51 = vmul.f32 %v1055_v50, %v999_v20  ;;  %v671_v52 = vpop.xlane.xlu1 %670 }
 0x225   : > { %1056 = vrcp.f32 %v671_v52 }
 0x226   : > { %983 = vmatmul.msk.f32.vlgmr.msra.gmra.mxu0 %vm513_vm1, %v682_v51 }
 0x228   : > { %v674_v53 = vpop.xlane.xlu2 %673 }
 0x229   : > { %1058 = vrcp.f32 %v674_v53 }
 0x22b   : > { %v1057_v54 = vpop.eup %1056 }
 0x22c   : > { %v683_v55 = vmul.f32 %v1057_v54, %v1004_v33 }
 0x22e   : > { %984 = vmatmul.msk.f32.vlgmr.msra.gmra.mxu1 %vm513_vm1, %v683_v55 }
 0x22f   : > { %v1059_v56 = vpop.eup %1058 }
 0x230   : > { %v684_v57 = vmul.f32 %v1059_v56, %v1009_v40  ;;  %v677_v58 = vpop.xlane.xlu2 %676 }
 0x231   : > { %1060 = vrcp.f32 %v677_v58 }
 0x232   : > { %985 = vmatmul.msk.f32.vlgmr.msra.gmra.mxu2 %vm513_vm1, %v684_v57 }
 0x237   : > { %v1061_v59 = vpop.eup %1060 }
 0x238   : > { %v685_v60 = vmul.f32 %v1061_v59, %v1014_v47 }
 0x23a   : > { %986 = vmatmul.msk.f32.vlgmr.msra.gmra.mxu3 %vm513_vm1, %v685_v60 }
 0x2a3   : > { %v706_v1 = vpop.f32.mrf.mxu0 }
 0x2a4   : > { %987 = vmatmul.msk.f32.vlgmr.msrb.gmra.mxu0 %vm513_vm1, %v706_v1 }
 0x2ab   : > { %v729_v2 = vpop.f32.mrf.mxu1 }
 0x2ac   : > { %988 = vmatmul.msk.f32.vlgmr.msrb.gmra.mxu1 %vm513_vm1, %v729_v2 }
 0x2b5   : > { %v752_v3 = vpop.f32.mrf.mxu2 }
 0x2b6   : > { %989 = vmatmul.msk.f32.vlgmr.msrb.gmra.mxu2 %vm513_vm1, %v752_v3 }
 0x2bd   : > { %v775_v4 = vpop.f32.mrf.mxu3 }
 0x2be   : > { %990 = vmatmul.msk.f32.vlgmr.msrb.gmra.mxu3 %vm513_vm1, %v775_v4 }
 0x321   : > { %v802_v6 = vpop.f32.mrf.mxu0 }
 0x322   : > { %v874_v9 = vsel %vm237_vm0, %v802_v6, 0.0 }
 0x329   : > { %v825_v5 = vpop.f32.mrf.mxu1 }
 0x32a   : > { %v875_v8 = vsel %vm237_vm0, %v825_v5, 0.0 }
 0x32b   : > { %v876_v11 = vadd.f32 %v875_v8, %v874_v9 }
 0x339   : > { %v848_v7 = vpop.f32.mrf.mxu2 }
 0x33a   : > { %v877_v10 = vsel %vm237_vm0, %v848_v7, 0.0 }
 0x33b   : > { %v878_v12 = vadd.f32 %v877_v10, %v876_v11 }
 0x341   : > { %v871_v13 = vpop.f32.mrf.mxu3 }
 0x342   : > { %v879_v14 = vsel %vm237_vm0, %v871_v13, 0.0 }
 0x343   : > { %v880_v15 = vadd.f32 %v879_v14, %v878_v12 }
 0x345   : > { %881 = vst.msk [vmem:[%s215_s8] sm:$0xff] %vm237_vm0, %v880_v15 }
 0x346   : > { %1089 = shalt.err (!%p1086_p3)
}
 0x347   : > { %1015 = dma.vmem_to_hbm [thread:$0]  (%p1194_p5), %s896_s9, 128, %s898_s10, %s883_s22  }
 0x348 PF: > { %p1021_p4 = scmp.ge.s32.totalorder %s1124_s21, 2  ;;  %s909_s23 = sand.u32 1, %s1112_s18  }
 0x349   : > { %s910_s25 = scalar_lea.sflag [#allocation3], %s909_s23 }
 0x34a   : > { %p1018_p7 = pnand %p1021_p4, %p1198_p6 }
 0x34c   : > { %p1019_p8 = pneg %p1018_p7 }
 0x34e   : > { %1107 = dma.done.wait (%p1019_p8), %s910_s25, 128  }
 0x34f   : > { %1109 = vsyncadd (%p1019_p8), %s910_s25, 4294967168  ;;  %p15_p9 = scmp.ge.s32.totalorder %s1181_s24, 10   ;;  %s1460_s18 = smov %s1116_s19 }
 0x350   : > { %s1461_s19 = smov %s1120_s20  ;;  %s1462_s20 = smov %s1192_s27 }
 0x351   : > { %s1463_s21 = smov %s1181_s24  ;;  %17 = sbr.rel (!%p15_p9) target bundleno = 3 (0x3), region = 75 }
 0x356   :  { %916 = vsyncpa [#allocation3], 1 }
 0x357   :  { %918 = vsyncpa [#allocation3 + $0x1], 1 }

</bundles_post_ra>
